<compile_context>
chip_gen: v5e
topology: v5e:2x2
jax: 0.10.0
libtpu: 0.0.40
codegen_flags: <defaults>
</compile_context>

<pallas_src>
import jax
import jax.numpy as jnp
from jax import lax
from jax.experimental import pallas as pl
from jax.experimental.pallas import tpu as pltpu


# ----------------------------- kernel ---------------------------------------
def cnn_kernel(x_ref, w1_ref, b1_ref, w2_ref, b2_ref,
               w3_ref, b3_ref, w4_ref, b4_ref, out_ref):
    # x_ref: (TB, L*Cin); weights pre-shaped in the wrapper; biases are f32.
    w1 = w1_ref[...]
    w2 = w2_ref[...]
    w3 = w3_ref[...]
    w4 = w4_ref[...]

    # conv1 (banded matmul) + bias + ReLU          -> (TB, 4*L)
    y = jnp.dot(x_ref[...], w1, preferred_element_type=jnp.float32)
    y = jnp.maximum(y + b1_ref[...], 0.0)

    # conv2 (banded matmul) + bias + ReLU          -> (TB, 8*L)
    y = jnp.dot(y.astype(w2.dtype), w2, preferred_element_type=jnp.float32)
    y = jnp.maximum(y + b2_ref[...], 0.0)

    # fc1 (flatten is already channel-major) + ReLU -> (TB, 128) lane-dense
    y = jnp.dot(y.astype(w3.dtype), w3, preferred_element_type=jnp.float32)
    y = jnp.maximum(y + b3_ref[...], 0.0)

    # fc2 (output zero-padded to 128 lanes)        -> (TB, 128)
    y = jnp.dot(y.astype(w4.dtype), w4, preferred_element_type=jnp.float32)
    out_ref[...] = y + b4_ref[...]


# ----------------------------- wrapper glue ----------------------------------
def _round_up(n, m):
    return ((n + m - 1) // m) * m


def _conv1d_as_dense(w, L, pad, row_channel_major):
    """Fold a Conv1d weight (Cout, Cin, K) with 'same' padding into a dense
    banded matrix of shape (Cin*L, Cout*L).

    Column index is always channel-major: co*L + l_out.
    Row index is l_in*Cin + ci (position-major, matches x.reshape(B, L*Cin))
    or ci*L + l_in (channel-major, matches the previous conv's output)."""
    Cout, Cin, K = w.shape
    k = jnp.arange(L)[:, None] - jnp.arange(L)[None, :] + pad   # (l_in, l_out)
    valid = ((k >= 0) & (k < K)).astype(w.dtype)
    tap = w[:, :, jnp.clip(k, 0, K - 1)] * valid                # (Cout, Cin, Lin, Lout)
    if row_channel_major:
        mat = jnp.transpose(tap, (1, 2, 0, 3))                  # (Cin, Lin, Cout, Lout)
    else:
        mat = jnp.transpose(tap, (2, 1, 0, 3))                  # (Lin, Cin, Cout, Lout)
    return mat.reshape(Cin * L, Cout * L)


def cnn_forward(x, params, *, compute_dtype=jnp.float32, batch_tile=1024):
    """x: (batch, sentence_length, vector_size) float32 — the module's input."""
    (w1, b1, w2, b2, fc1w, fc1b, fc2w, fc2b) = params
    B, L, Cin = x.shape
    C1, C2 = 4 * L, 8 * L          # conv1 / conv2 flattened widths
    H, OUTP = 128, 128             # fc hidden / output widths, lane-padded

    # --- re-layout parameters (pure glue, exact) ---
    w1m = _conv1d_as_dense(w1, L, 1, row_channel_major=False)   # (L*Cin, C1)
    w2m = _conv1d_as_dense(w2, L, 2, row_channel_major=True)    # (C1,    C2)
    b1r = jnp.repeat(b1, L).reshape(1, C1).astype(jnp.float32)  # bias[c*L+l] = b1[c]
    b2r = jnp.repeat(b2, L).reshape(1, C2).astype(jnp.float32)
    nh, no = fc1w.shape[0], fc2w.shape[0]                       # 40, 2
    w3 = jnp.zeros((C2, H), jnp.float32).at[:, :nh].set(fc1w.T)
    b3 = jnp.zeros((1, H), jnp.float32).at[:, :nh].set(fc1b)
    w4 = jnp.zeros((H, OUTP), jnp.float32).at[:nh, :no].set(fc2w.T)
    b4 = jnp.zeros((1, OUTP), jnp.float32).at[:, :no].set(fc2b)

    # --- batch tiling (pad B to a multiple of the tile; TB multiple of 8) ---
    TB = min(batch_tile, _round_up(B, 8))
    Bp = _round_up(B, TB)
    xf = x.reshape(B, L * Cin)
    if Bp != B:
        xf = jnp.pad(xf, ((0, Bp - B), (0, 0)))

    cd = compute_dtype
    xf = xf.astype(cd)
    w1c, w2c, w3c, w4c = (w1m.astype(cd), w2m.astype(cd),
                          w3.astype(cd), w4.astype(cd))

    itemsize = jnp.dtype(cd).itemsize
    wsize = L * Cin * C1 + C1 * C2 + C2 * H + H * OUTP
    flops = 2 * Bp * wsize
    bytes_accessed = (Bp * L * Cin * itemsize + Bp * OUTP * 4
                      + wsize * itemsize + (C1 + C2 + H + OUTP) * 4)

    const2 = lambda i: (0, 0)
    out = pl.pallas_call(
        cnn_kernel,
        out_shape=jax.ShapeDtypeStruct((Bp, OUTP), jnp.float32),
        grid_spec=pltpu.PrefetchScalarGridSpec(
            num_scalar_prefetch=0,
            grid=(pl.cdiv(Bp, TB),),
            in_specs=[
                pl.BlockSpec((TB, L * Cin), lambda i: (i, 0)),   # x tile (pipelined)
                pl.BlockSpec((L * Cin, C1), const2),             # conv1 matrix (resident)
                pl.BlockSpec((1, C1), const2),
                pl.BlockSpec((C1, C2), const2),                  # conv2 matrix
                pl.BlockSpec((1, C2), const2),
                pl.BlockSpec((C2, H), const2),                   # fc1
                pl.BlockSpec((1, H), const2),
                pl.BlockSpec((H, OUTP), const2),                 # fc2 (lane-padded)
                pl.BlockSpec((1, OUTP), const2),
            ],
            out_specs=pl.BlockSpec((TB, OUTP), lambda i: (i, 0)),
        ),
        compiler_params=pltpu.CompilerParams(
            dimension_semantics=("parallel",),
            vmem_limit_bytes=32 * 1024 * 1024),
        cost_estimate=pl.CostEstimate(flops=flops, transcendentals=0,
                                      bytes_accessed=bytes_accessed),
    )(xf, w1c, b1r, w2c, b2r, w3c, b3, w4c, b4)

    return out[:B, :2]


# ----------------------------- reference & params ---------------------------
def reference_forward(x, params):
    """Independent pure-JAX reference mirroring the PyTorch forward."""
    (w1, b1, w2, b2, fc1w, fc1b, fc2w, fc2b) = params
    xt = jnp.transpose(x, (0, 2, 1))                 # (B, C, L)  (NCL)
    dn = ('NCH', 'OIH', 'NCH')
    y1 = jax.nn.relu(lax.conv_general_dilated(xt, w1, (1,), [(1, 1)],
                                              dimension_numbers=dn)
                     + b1[None, :, None])
    y2 = jax.nn.relu(lax.conv_general_dilated(y1, w2, (1,), [(2, 2)],
                                              dimension_numbers=dn)
                     + b2[None, :, None])
    flat = y2.reshape(y2.shape[0], -1)               # channel-major flatten
    h = jax.nn.relu(flat @ fc1w.T + fc1b)
    return h @ fc2w.T + fc2b


def init_params(key, vector_size, sentence_length):
    """Deterministic synthetic parameters with PyTorch module shapes."""
    ks = jax.random.split(key, 8)

    def u(k, shape, fan_in):
        bound = 1.0 / jnp.sqrt(float(fan_in))
        return jax.random.uniform(k, shape, jnp.float32, -bound, bound)

    w1 = u(ks[0], (4, vector_size, 3), vector_size * 3)        # conv1.weight
    b1 = u(ks[1], (4,), vector_size * 3)                       # conv1.bias
    w2 = u(ks[2], (8, 4, 5), 4 * 5)                            # conv2.weight
    b2 = u(ks[3], (8,), 4 * 5)                                 # conv2.bias
    fc1w = u(ks[4], (40, 8 * sentence_length), 8 * sentence_length)
    fc1b = u(ks[5], (40,), 8 * sentence_length)
    fc2w = u(ks[6], (2, 40), 40)
    fc2b = u(ks[7], (2,), 40)
    return (w1, b1, w2, b2, fc1w, fc1b, fc2w, fc2b)


if __name__ == "__main__":
    vector_size = 4        # input embedding channels
    sentence_length = 16   # sequence length
    batch = 2

    key = jax.random.PRNGKey(0)
    k_x, k_p, k_x2 = jax.random.split(key, 3)
    x = jax.random.normal(k_x, (batch, sentence_length, vector_size), jnp.float32)
    params = init_params(k_p, vector_size, sentence_length)
    ref = reference_forward(x, params)

    # f32 path
    out = jax.block_until_ready(cnn_forward(x, params))
    assert out.shape == (batch, 2), out.shape
    assert jnp.allclose(out, ref, atol=1e-3, rtol=1e-3), (out, ref)

    # bf16 matmul-input path (f32 accumulation) — v6e/v7x bandwidth optimization
    out_bf16 = jax.block_until_ready(
        cnn_forward(x, params, compute_dtype=jnp.bfloat16))
    assert jnp.allclose(out_bf16, ref, atol=5e-2, rtol=5e-2), (out_bf16, ref)

    # larger batch: exercises the batch grid (>1 step) and batch padding
    xb = jax.random.normal(k_x2, (200, sentence_length, vector_size), jnp.float32)
    refb = reference_forward(xb, params)
    outb = jax.block_until_ready(cnn_forward(xb, params, batch_tile=128))
    assert outb.shape == (200, 2), outb.shape
    assert jnp.allclose(outb, refb, atol=1e-3, rtol=1e-3), (outb, refb)

    print("KERNEL_OK")
</pallas_src>

<mosaic_0001>
module attributes {stable_mosaic.version = 11 : i64} {
  func.func @cnn_kernel(%arg0: i32, %arg1: memref<8x64xf32, #tpu.memory_space<vmem>>, %arg2: memref<64x64xf32, #tpu.memory_space<vmem>>, %arg3: memref<1x64xf32, #tpu.memory_space<vmem>>, %arg4: memref<64x128xf32, #tpu.memory_space<vmem>>, %arg5: memref<1x128xf32, #tpu.memory_space<vmem>>, %arg6: memref<128x128xf32, #tpu.memory_space<vmem>>, %arg7: memref<1x128xf32, #tpu.memory_space<vmem>>, %arg8: memref<128x128xf32, #tpu.memory_space<vmem>>, %arg9: memref<1x128xf32, #tpu.memory_space<vmem>>, %arg10: memref<8x128xf32, #tpu.memory_space<vmem>>) attributes {dimension_semantics = [#tpu.dimension_semantics<parallel>], iteration_bounds = array<i64: 1>, scalar_prefetch = 0 : i64, scratch_operands = 0 : i64, tpu.core_type = #tpu.core_type<tc>, window_params = [{transform_indices = @transform_0, window_bounds = array<i64: 8, 64>}, {pipeline_mode = #tpu.pipeline_mode<synchronous>, transform_indices = @transform_1, window_bounds = array<i64: 64, 64>}, {pipeline_mode = #tpu.pipeline_mode<synchronous>, transform_indices = @transform_2, window_bounds = array<i64: 1, 64>}, {pipeline_mode = #tpu.pipeline_mode<synchronous>, transform_indices = @transform_3, window_bounds = array<i64: 64, 128>}, {pipeline_mode = #tpu.pipeline_mode<synchronous>, transform_indices = @transform_4, window_bounds = array<i64: 1, 128>}, {pipeline_mode = #tpu.pipeline_mode<synchronous>, transform_indices = @transform_5, window_bounds = array<i64: 128, 128>}, {pipeline_mode = #tpu.pipeline_mode<synchronous>, transform_indices = @transform_6, window_bounds = array<i64: 1, 128>}, {pipeline_mode = #tpu.pipeline_mode<synchronous>, transform_indices = @transform_7, window_bounds = array<i64: 128, 128>}, {pipeline_mode = #tpu.pipeline_mode<synchronous>, transform_indices = @transform_8, window_bounds = array<i64: 1, 128>}, {transform_indices = @transform_9, window_bounds = array<i64: 8, 128>}]} {
    %c0 = arith.constant 0 : index
    %c0_0 = arith.constant 0 : index
    %0 = vector.load %arg2[%c0, %c0_0] : memref<64x64xf32, #tpu.memory_space<vmem>>, vector<64x64xf32>
    %c0_1 = arith.constant 0 : index
    %c0_2 = arith.constant 0 : index
    %1 = vector.load %arg4[%c0_1, %c0_2] : memref<64x128xf32, #tpu.memory_space<vmem>>, vector<64x128xf32>
    %c0_3 = arith.constant 0 : index
    %c0_4 = arith.constant 0 : index
    %2 = vector.load %arg6[%c0_3, %c0_4] : memref<128x128xf32, #tpu.memory_space<vmem>>, vector<128x128xf32>
    %c0_5 = arith.constant 0 : index
    %c0_6 = arith.constant 0 : index
    %3 = vector.load %arg8[%c0_5, %c0_6] : memref<128x128xf32, #tpu.memory_space<vmem>>, vector<128x128xf32>
    %c0_7 = arith.constant 0 : index
    %c0_8 = arith.constant 0 : index
    %4 = vector.load %arg1[%c0_7, %c0_8] : memref<8x64xf32, #tpu.memory_space<vmem>>, vector<8x64xf32>
    %cst = arith.constant dense<0.000000e+00> : vector<8x64xf32>
    %5 = tpu.matmul %4, %0, %cst {dimension_numbers = #tpu.dot_dimension_numbers<[1], [0], [0], [1], [0, 0, 1, 1], [], []>} : vector<8x64xf32>, vector<64x64xf32>, vector<8x64xf32> -> vector<8x64xf32>
    %c0_9 = arith.constant 0 : index
    %c0_10 = arith.constant 0 : index
    %6 = vector.load %arg3[%c0_9, %c0_10] : memref<1x64xf32, #tpu.memory_space<vmem>>, vector<1x64xf32>
    %7 = vector.broadcast %6 : vector<1x64xf32> to vector<8x64xf32>
    %8 = arith.addf %5, %7 : vector<8x64xf32>
    %cst_11 = arith.constant 0.000000e+00 : f32
    %9 = vector.broadcast %cst_11 : f32 to vector<8x64xf32>
    %10 = arith.maximumf %8, %9 : vector<8x64xf32>
    %cst_12 = arith.constant dense<0.000000e+00> : vector<8x128xf32>
    %11 = tpu.matmul %10, %1, %cst_12 {dimension_numbers = #tpu.dot_dimension_numbers<[1], [0], [0], [1], [0, 0, 1, 1], [], []>} : vector<8x64xf32>, vector<64x128xf32>, vector<8x128xf32> -> vector<8x128xf32>
    %c0_13 = arith.constant 0 : index
    %c0_14 = arith.constant 0 : index
    %12 = vector.load %arg5[%c0_13, %c0_14] : memref<1x128xf32, #tpu.memory_space<vmem>>, vector<1x128xf32>
    %13 = vector.broadcast %12 : vector<1x128xf32> to vector<8x128xf32>
    %14 = arith.addf %11, %13 : vector<8x128xf32>
    %cst_15 = arith.constant 0.000000e+00 : f32
    %15 = vector.broadcast %cst_15 : f32 to vector<8x128xf32>
    %16 = arith.maximumf %14, %15 : vector<8x128xf32>
    %cst_16 = arith.constant dense<0.000000e+00> : vector<8x128xf32>
    %17 = tpu.matmul %16, %2, %cst_16 {dimension_numbers = #tpu.dot_dimension_numbers<[1], [0], [0], [1], [0, 0, 1, 1], [], []>} : vector<8x128xf32>, vector<128x128xf32>, vector<8x128xf32> -> vector<8x128xf32>
    %c0_17 = arith.constant 0 : index
    %c0_18 = arith.constant 0 : index
    %18 = vector.load %arg7[%c0_17, %c0_18] : memref<1x128xf32, #tpu.memory_space<vmem>>, vector<1x128xf32>
    %19 = vector.broadcast %18 : vector<1x128xf32> to vector<8x128xf32>
    %20 = arith.addf %17, %19 : vector<8x128xf32>
    %cst_19 = arith.constant 0.000000e+00 : f32
    %21 = vector.broadcast %cst_19 : f32 to vector<8x128xf32>
    %22 = arith.maximumf %20, %21 : vector<8x128xf32>
    %cst_20 = arith.constant dense<0.000000e+00> : vector<8x128xf32>
    %23 = tpu.matmul %22, %3, %cst_20 {dimension_numbers = #tpu.dot_dimension_numbers<[1], [0], [0], [1], [0, 0, 1, 1], [], []>} : vector<8x128xf32>, vector<128x128xf32>, vector<8x128xf32> -> vector<8x128xf32>
    %c0_21 = arith.constant 0 : index
    %c0_22 = arith.constant 0 : index
    %24 = vector.load %arg9[%c0_21, %c0_22] : memref<1x128xf32, #tpu.memory_space<vmem>>, vector<1x128xf32>
    %25 = vector.broadcast %24 : vector<1x128xf32> to vector<8x128xf32>
    %26 = arith.addf %23, %25 : vector<8x128xf32>
    %c0_23 = arith.constant 0 : index
    %c0_24 = arith.constant 0 : index
    %27 = vector.load %arg10[%c0_23, %c0_24] : memref<8x128xf32, #tpu.memory_space<vmem>>, vector<8x128xf32>
    tpu.vector_store %arg10[%c0_23, %c0_24], %26 {strides = array<i32>} : memref<8x128xf32, #tpu.memory_space<vmem>>, vector<8x128xf32>,
    return
  }
  func.func @transform_0(%arg0: i32) -> (i32, i32) {
    %c0_i32 = arith.constant 0 : i32
    %c0_i32_0 = arith.constant 0 : i32
    return %arg0, %c0_i32 : i32, i32
  }
  func.func @transform_1(%arg0: i32) -> (i32, i32) {
    %c0_i32 = arith.constant 0 : i32
    %c0_i32_0 = arith.constant 0 : i32
    %c0_i32_1 = arith.constant 0 : i32
    return %c0_i32, %c0_i32_0 : i32, i32
  }
  func.func @transform_2(%arg0: i32) -> (i32, i32) {
    %c0_i32 = arith.constant 0 : i32
    %c0_i32_0 = arith.constant 0 : i32
    %c0_i32_1 = arith.constant 0 : i32
    return %c0_i32, %c0_i32_0 : i32, i32
  }
  func.func @transform_3(%arg0: i32) -> (i32, i32) {
    %c0_i32 = arith.constant 0 : i32
    %c0_i32_0 = arith.constant 0 : i32
    %c0_i32_1 = arith.constant 0 : i32
    return %c0_i32, %c0_i32_0 : i32, i32
  }
  func.func @transform_4(%arg0: i32) -> (i32, i32) {
    %c0_i32 = arith.constant 0 : i32
    %c0_i32_0 = arith.constant 0 : i32
    %c0_i32_1 = arith.constant 0 : i32
    return %c0_i32, %c0_i32_0 : i32, i32
  }
  func.func @transform_5(%arg0: i32) -> (i32, i32) {
    %c0_i32 = arith.constant 0 : i32
    %c0_i32_0 = arith.constant 0 : i32
    %c0_i32_1 = arith.constant 0 : i32
    return %c0_i32, %c0_i32_0 : i32, i32
  }
  func.func @transform_6(%arg0: i32) -> (i32, i32) {
    %c0_i32 = arith.constant 0 : i32
    %c0_i32_0 = arith.constant 0 : i32
    %c0_i32_1 = arith.constant 0 : i32
    return %c0_i32, %c0_i32_0 : i32, i32
  }
  func.func @transform_7(%arg0: i32) -> (i32, i32) {
    %c0_i32 = arith.constant 0 : i32
    %c0_i32_0 = arith.constant 0 : i32
    %c0_i32_1 = arith.constant 0 : i32
    return %c0_i32, %c0_i32_0 : i32, i32
  }
  func.func @transform_8(%arg0: i32) -> (i32, i32) {
    %c0_i32 = arith.constant 0 : i32
    %c0_i32_0 = arith.constant 0 : i32
    %c0_i32_1 = arith.constant 0 : i32
    return %c0_i32, %c0_i32_0 : i32, i32
  }
  func.func @transform_9(%arg0: i32) -> (i32, i32) {
    %c0_i32 = arith.constant 0 : i32
    %c0_i32_0 = arith.constant 0 : i32
    return %arg0, %c0_i32 : i32, i32
  }
}

</mosaic_0001>

<bundles_post_ra>
// kernel: tpu_custom_call.1
= control target key start
LH: loop header
LB: loop body
LE: loop exit
PB: predicated region body
PF: predicated region fallthrough
CT: control target
= control target key end

     0   :  { %14 = vsyncpa [#allocation3], 0  ;;  %s540_s0 = inlined_call_operand.hbm [shape: f32[8,64], index: 0, kind: input, shape index: {}]   ;;  %s541_s1 = inlined_call_operand.hbm [shape: f32[64,64], index: 1, kind: input, shape index: {}]   ;;  %s542_s2 = inlined_call_operand.vmem [shape: f32[1,64], index: 2, kind: input, shape index: {}]   ;;  %s543_s3 = inlined_call_operand.hbm [shape: f32[64,128], index: 3, kind: input, shape index: {}]   ;;  %s544_s4 = inlined_call_operand.vmem [shape: f32[1,128], index: 4, kind: input, shape index: {}]   ;;  %s545_s5 = inlined_call_operand.hbm [shape: f32[128,128], index: 5, kind: input, shape index: {}]   ;;  %s546_s6 = inlined_call_operand.vmem [shape: f32[1,128], index: 6, kind: input, shape index: {}]   ;;  %s547_s7 = inlined_call_operand.hbm [shape: f32[128,128], index: 7, kind: input, shape index: {}]   ;;  %s548_s8 = inlined_call_operand.vmem [shape: f32[1,128], index: 8, kind: input, shape index: {}]   ;;  %s549_s9 = inlined_call_operand.hbm [shape: f32[8,128], index: 9, kind: output, shape index: {}]  }
   0x1   :  { %15 = vsyncpa [#allocation6], 0 }
   0x2   :  { %16 = vsyncpa [#allocation9], 0  ;;  %s33_s11 = sshll.u32 %s541_s1, 4  ;;  %s34_s11 = int_to_ptr.hbm [resolvable:$true] %s33_s11 }
   0x3   :  { %17 = vsyncpa [#allocation4], 0  ;;  %s450_s12 = smov [#allocation5]   ;;  %s63_s16 = sshll.u32 %s545_s5, 4  ;;  %s64_s16 = int_to_ptr.hbm [resolvable:$true] %s63_s16 }
   0x4   :  { %s35_s13 = sshll.u32 %s450_s12, 4  ;;  %s451_s17 = smov 128   ;;  %s36_s13 = int_to_ptr.vmem [resolvable:$true] %s35_s13 }
   0x5   :  { %s452_s18 = smov 8   ;;  %s453_s19 = smov [#allocation8]  }
   0x6   :  { %41 = dma.hbm_to_vmem [thread:$0]  %s34_s11, 1024, %s36_s13, [#allocation6], %s451_s17, %s451_s17, %s452_s18  }
   0x7   :  { %s65_s20 = sshll.u32 %s453_s19, 4  ;;  %s23_s23 = sshll.u32 %s540_s0, 4  ;;  %s66_s20 = int_to_ptr.vmem [resolvable:$true] %s65_s20  ;;  %s24_s23 = int_to_ptr.hbm [resolvable:$true] %s23_s23 }
   0x8   :  { %71 = dma.hbm_to_vmem [thread:$0]  %s64_s16, 2048, %s66_s20, [#allocation9], %s451_s17, %s451_s17, %s452_s18  }
   0x9   :  { %s48_s25 = sshll.u32 %s543_s3, 4  ;;  %s454_s26 = smov [#allocation2]   ;;  %s49_s25 = int_to_ptr.hbm [resolvable:$true] %s48_s25 }
   0xa   :  { %s25_s27 = sshll.u32 %s454_s26, 4  ;;  %s455_s5 = smov [#allocation7]   ;;  %s26_s27 = int_to_ptr.vmem [resolvable:$true] %s25_s27 }
   0xb   :  { %28 = dma.hbm_to_vmem [thread:$0]  %s24_s23, 128, %s26_s27, [#allocation3]  }
   0xc   :  { %s50_s28 = sshll.u32 %s455_s5, 4  ;;  %s78_s10 = sshll.u32 %s547_s7, 4  ;;  %s51_s28 = int_to_ptr.vmem [resolvable:$true] %s50_s28  ;;  %s79_s10 = int_to_ptr.hbm [resolvable:$true] %s78_s10 }
   0xd   :  { %56 = dma.hbm_to_vmem [thread:$0]  %s49_s25, 1024, %s51_s28, [#allocation6], %s451_s17, %s451_s17, %s452_s18  }
   0xe   :  { %s456_s0 = smov [#allocation10]  }
   0xf   :  { %s80_s11 = sshll.u32 %s456_s0, 4  ;;  %s81_s11 = int_to_ptr.vmem [resolvable:$true] %s80_s11 }
  0x10   :  { %86 = dma.hbm_to_vmem [thread:$0]  %s79_s10, 2048, %s81_s11, [#allocation9], %s451_s17, %s451_s17, %s452_s18  }
  0x11   :  { %442 = dma.done.wait [#allocation3], 128  }
  0x12   :  { %443 = vsyncadd [#allocation3], 4294967168 }
  0x13   :  { %444 = dma.done.wait [#allocation6], 2048  }
  0x14   :  { %445 = vsyncadd [#allocation6], 4294965248 }
  0x15   :  { %446 = dma.done.wait [#allocation9], 4096  }
  0x16   :  { %447 = vsyncadd [#allocation9], 4294963200  ;;  %v116_v0 = vld [vmem:[#allocation5 + $0x38] sm:$0xff]  ;;  %v115_v1 = vld [vmem:[#allocation5 + $0x30] sm:$0xff]  ;;  %vm162_vm0 = vcmask 523264   ;;  %s457_s16 = smov [#allocation11]  }
  0x17   :  { %174 = vmatpush.msra.mxu0 %v116_v0  ;;  %v114_v2 = vld [vmem:[#allocation5 + $0x28] sm:$0xff]  ;;  %v124_v3 = vld [vmem:[#allocation7 + $0x38] sm:$0xff]  ;;  %v123_v4 = vld [vmem:[#allocation7 + $0x30] sm:$0xff]  ;;  %s270_s17 = sshll.u32 %s457_s16, 4  ;;  %s272_s20 = sshll.u32 %s549_s9, 4  ;;  %s271_s17 = int_to_ptr.vmem [resolvable:$true] %s270_s17  ;;  %s273_s20 = int_to_ptr.hbm [resolvable:$true] %s272_s20 }
  0x18   :  { %v113_v5 = vld [vmem:[#allocation5 + $0x20] sm:$0xff]  ;;  %202 = vmatpush.msra.mxu1 %v124_v3  ;;  %v122_v6 = vld [vmem:[#allocation7 + $0x28] sm:$0xff]  ;;  %v112_v7 = vld [vmem:[#allocation5 + $0x18] sm:$0xff] }
  0x19   :  { %175 = vmatpush.msra.mxu0 %v115_v1  ;;  %v121_v8 = vld [vmem:[#allocation7 + $0x20] sm:$0xff]  ;;  %v111_v9 = vld [vmem:[#allocation5 + $0x10] sm:$0xff]  ;;  %v120_v10 = vld [vmem:[#allocation7 + $0x18] sm:$0xff] }
  0x1a   :  { %203 = vmatpush.msra.mxu1 %v123_v4  ;;  %v110_v11 = vld [vmem:[#allocation5 + $0x8] sm:$0xff]  ;;  %v109_v12 = vld [vmem:[#allocation5] sm:$0xff]  ;;  %v157_v13 = vld [vmem:[#allocation2] sm:$0xff] }
  0x1b   :  { %176 = vmatpush.msra.mxu0 %v114_v2  ;;  %v119_v14 = vld [vmem:[#allocation7 + $0x10] sm:$0xff]  ;;  %v118_v15 = vld [vmem:[#allocation7 + $0x8] sm:$0xff]  ;;  %v117_v16 = vld [vmem:[#allocation7] sm:$0xff] }
  0x1c   :  { %204 = vmatpush.msra.mxu1 %v122_v6  ;;  %v140_v17 = vld [vmem:[#allocation8 + $0x78] sm:$0xff]  ;;  %v139_v18 = vld [vmem:[#allocation8 + $0x70] sm:$0xff]  ;;  %v138_v19 = vld [vmem:[#allocation8 + $0x68] sm:$0xff] }
  0x1d   :  { %177 = vmatpush.msra.mxu0 %v113_v5  ;;  %219 = vmatpush.msra.mxu2 %v140_v17  ;;  %v137_v20 = vld [vmem:[#allocation8 + $0x60] sm:$0xff]  ;;  %v136_v21 = vld [vmem:[#allocation8 + $0x58] sm:$0xff]  ;;  %v135_v22 = vld [vmem:[#allocation8 + $0x50] sm:$0xff] }
  0x1e   :  { %205 = vmatpush.msra.mxu1 %v121_v8  ;;  %v134_v23 = vld [vmem:[#allocation8 + $0x48] sm:$0xff]  ;;  %v133_v24 = vld [vmem:[#allocation8 + $0x40] sm:$0xff]  ;;  %v132_v25 = vld [vmem:[#allocation8 + $0x38] sm:$0xff] }
  0x1f   :  { %178 = vmatpush.msra.mxu0 %v112_v7  ;;  %220 = vmatpush.msra.mxu2 %v139_v18  ;;  %v131_v26 = vld [vmem:[#allocation8 + $0x30] sm:$0xff]  ;;  %v130_v27 = vld [vmem:[#allocation8 + $0x28] sm:$0xff]  ;;  %v129_v28 = vld [vmem:[#allocation8 + $0x20] sm:$0xff] }
  0x20   :  { %206 = vmatpush.msra.mxu1 %v120_v10  ;;  %v128_v29 = vld [vmem:[#allocation8 + $0x18] sm:$0xff]  ;;  %v127_v34 = vld [vmem:[#allocation8 + $0x10] sm:$0xff]  ;;  %v126_v35 = vld [vmem:[#allocation8 + $0x8] sm:$0xff] }
  0x21   :  { %179 = vmatpush.msra.mxu0 %v111_v9  ;;  %221 = vmatpush.msra.mxu2 %v138_v19  ;;  %v294_v30 = vld [vmem:[%s542_s2] ss:$0 sm:$0xff]  ;;  %v125_v36 = vld [vmem:[#allocation8] sm:$0xff]  ;;  %v155_v38 = vld [vmem:[#allocation10 + $0x70] sm:$0xff] }
  0x22   :  { %207 = vmatpush.msra.mxu1 %v119_v14  ;;  %v156_v37 = vld [vmem:[#allocation10 + $0x78] sm:$0xff]  ;;  %v154_v39 = vld [vmem:[#allocation10 + $0x68] sm:$0xff]  ;;  %v153_v40 = vld [vmem:[#allocation10 + $0x60] sm:$0xff] }
  0x23   :  { %180 = vmatpush.msra.mxu0 %v110_v11  ;;  %222 = vmatpush.msra.mxu2 %v137_v20  ;;  %v152_v41 = vld [vmem:[#allocation10 + $0x58] sm:$0xff]  ;;  %v151_v42 = vld [vmem:[#allocation10 + $0x50] sm:$0xff]  ;;  %v150_v43 = vld [vmem:[#allocation10 + $0x48] sm:$0xff] }
  0x24   :  { %208 = vmatpush.msra.mxu1 %v118_v15  ;;  %244 = vmatpush.msra.mxu3 %v156_v37  ;;  %v149_v44 = vld [vmem:[#allocation10 + $0x40] sm:$0xff]  ;;  %v148_v45 = vld [vmem:[#allocation10 + $0x38] sm:$0xff]  ;;  %v147_v46 = vld [vmem:[#allocation10 + $0x30] sm:$0xff] }
  0x25   :  { %181 = vmatpush.msra.mxu0 %v109_v12  ;;  %223 = vmatpush.msra.mxu2 %v136_v21  ;;  %v146_v47 = vld [vmem:[#allocation10 + $0x28] sm:$0xff]  ;;  %v145_v48 = vld [vmem:[#allocation10 + $0x20] sm:$0xff]  ;;  %v144_v49 = vld [vmem:[#allocation10 + $0x18] sm:$0xff] }
  0x26   :  { %284 = vmatmul.msk.f32.vlgmr.msra.gmra.mxu0 %vm162_vm0, %v157_v13  ;;  %209 = vmatpush.msra.mxu1 %v117_v16  ;;  %v295_v50 = vld [vmem:[%s544_s4] ss:$0 sm:$0xff]  ;;  %v143_v54 = vld [vmem:[#allocation10 + $0x10] sm:$0xff]  ;;  %v142_v55 = vld [vmem:[#allocation10 + $0x8] sm:$0xff] }
  0x27   :  { %224 = vmatpush.msra.mxu2 %v135_v22  ;;  %245 = vmatpush.msra.mxu3 %v155_v38  ;;  %v141_v56 = vld [vmem:[#allocation10] sm:$0xff]  ;;  %v296_v57 = vld [vmem:[%s546_s6] ss:$0 sm:$0xff] }
  0x28   :  { %v297_v61 = vld [vmem:[%s548_s8] ss:$0 sm:$0xff] }
  0x29   :  { %225 = vmatpush.msra.mxu2 %v134_v23  ;;  %246 = vmatpush.msra.mxu3 %v154_v39 }
  0x2b   :  { %226 = vmatpush.msra.mxu2 %v133_v24  ;;  %247 = vmatpush.msra.mxu3 %v153_v40 }
  0x2d   :  { %227 = vmatpush.msra.mxu2 %v132_v25  ;;  %248 = vmatpush.msra.mxu3 %v152_v41 }
  0x2f   :  { %228 = vmatpush.msra.mxu2 %v131_v26  ;;  %249 = vmatpush.msra.mxu3 %v151_v42 }
  0x31   :  { %229 = vmatpush.msra.mxu2 %v130_v27  ;;  %250 = vmatpush.msra.mxu3 %v150_v43 }
  0x33   :  { %230 = vmatpush.msra.mxu2 %v129_v28  ;;  %251 = vmatpush.msra.mxu3 %v149_v44 }
  0x35   :  { %231 = vmatpush.msra.mxu2 %v128_v29  ;;  %252 = vmatpush.msra.mxu3 %v148_v45 }
  0x37   :  { %232 = vmatpush.msra.mxu2 %v127_v34  ;;  %253 = vmatpush.msra.mxu3 %v147_v46 }
  0x39   :  { %233 = vmatpush.msra.mxu2 %v126_v35  ;;  %254 = vmatpush.msra.mxu3 %v146_v47 }
  0x3b   :  { %234 = vmatpush.msra.mxu2 %v125_v36  ;;  %255 = vmatpush.msra.mxu3 %v145_v48 }
  0x3d   :  { %256 = vmatpush.msra.mxu3 %v144_v49 }
  0x3f   :  { %257 = vmatpush.msra.mxu3 %v143_v54 }
  0x41   :  { %258 = vmatpush.msra.mxu3 %v142_v55 }
  0x43   :  { %259 = vmatpush.msra.mxu3 %v141_v56 }
  0xa3   :  { %v183_v31 = vpop.f32.mrf.mxu0 }
  0xa4   :  { %v184_v32 = vadd.f32 %v294_v30, %v183_v31 }
  0xa6   :  { %v186_v33 = vmax.f32 %v184_v32, 0.0 }
  0xa8   :  { %285 = vmatmul.msk.f32.vlgmr.msra.gmra.mxu1 %vm162_vm0, %v186_v33 }
 0x125   :  { %v211_v51 = vpop.f32.mrf.mxu1 }
 0x126   :  { %v212_v52 = vadd.f32 %v295_v50, %v211_v51 }
 0x128   :  { %v214_v53 = vmax.f32 %v212_v52, 0.0 }
 0x12a   :  { %235 = vmatmul.f32.vlgmr.msra.gmra.mxu2 %v214_v53 }
 0x1ad   :  { %v236_v58 = vpop.f32.mrf.mxu2 }
 0x1ae   :  { %v237_v59 = vadd.f32 %v296_v57, %v236_v58 }
 0x1b0   :  { %v239_v60 = vmax.f32 %v237_v59, 0.0 }
 0x1b2   :  { %260 = vmatmul.f32.vlgmr.msra.gmra.mxu3 %v239_v60 }
 0x235   :  { %v261_v62 = vpop.f32.mrf.mxu3 }
 0x236   :  { %v262_v63 = vadd.f32 %v297_v61, %v261_v62 }
 0x238   :  { %264 = vst [vmem:[#allocation11] sm:$0xff] %v262_v63 }
 0x239   :  { %275 = dma.vmem_to_hbm [thread:$0]  %s271_s17, 128, %s273_s20, [#allocation4]  }
 0x23a   :  { %448 = dma.done.wait [#allocation4], 128  }
 0x23b   :  { %449 = vsyncadd [#allocation4], 4294967168 }
 0x23c   :  { %280 = vsyncpa [#allocation3], 1 }
 0x23d   :  { %281 = vsyncpa [#allocation6], 1 }
 0x23e   :  { %282 = vsyncpa [#allocation9], 1 }
 0x23f   :  { %283 = vsyncpa [#allocation4], 1 }

</bundles_post_ra>
